<compile_context>
chip_gen: v5e
topology: v5e:2x2
jax: 0.10.0
libtpu: 0.0.40
codegen_flags: <defaults>
</compile_context>

<pallas_src>
import functools

import jax
import jax.numpy as jnp
from jax.experimental import pallas as pl
from jax.experimental.pallas import tpu as pltpu

_LANES = 128


def _silog_partial_kernel(est_ref, gt_ref, mask_ref, out_ref,
                          acc_d, acc_d2, acc_cnt,
                          *, blocks_per_chunk, valid_rows, mask_tail_rows):
    c = pl.program_id(0)          # parallel chunk (one per TensorCore on v7x)
    i = pl.program_id(1)          # sequential reduction step within the chunk

    @pl.when(i == 0)
    def _init():
        acc_d[...] = jnp.zeros_like(acc_d)
        acc_d2[...] = jnp.zeros_like(acc_d2)
        acc_cnt[...] = jnp.zeros_like(acc_cnt)

    m = mask_ref[...] != 0
    if mask_tail_rows:
        # Rows at/after `valid_rows` belong to over-coverage of the last tile
        # (or to a clamped out-of-range tile) and must not contribute.
        tile_rows = mask_ref.shape[0]
        base_row = (c * blocks_per_chunk + i) * tile_rows
        row_ids = jax.lax.broadcasted_iota(jnp.int32, m.shape, 0) + base_row
        m = jnp.logical_and(m, row_ids < valid_rows)

    # Masked-out entries become log(1) - log(1) = 0 (guards the log, too).
    est = jnp.where(m, est_ref[...].astype(jnp.float32), 1.0)
    gt = jnp.where(m, gt_ref[...].astype(jnp.float32), 1.0)
    d = jnp.log(est) - jnp.log(gt)

    acc_d[...] += jnp.sum(d, axis=0, keepdims=True)
    acc_d2[...] += jnp.sum(d * d, axis=0, keepdims=True)
    acc_cnt[...] += jnp.sum(m.astype(jnp.float32), axis=0, keepdims=True)

    @pl.when(i == pl.num_programs(1) - 1)
    def _finalize():
        out_ref[0, 0:1, :] = acc_d[...]
        out_ref[0, 1:2, :] = acc_d2[...]
        out_ref[0, 2:3, :] = acc_cnt[...]


def silog_loss(depth_est, depth_gt, mask, variance_focus, *, tile_rows=4096):
    """Pallas implementation of silog_loss.forward(depth_est, depth_gt, mask)."""
    est = depth_est.reshape(-1)
    gt = depth_gt.reshape(-1)
    msk = mask.reshape(-1)

    # Keep native f32/bf16 depth streams (cast to f32 inside the kernel).
    if est.dtype not in (jnp.float32, jnp.bfloat16):
        est = est.astype(jnp.float32)
    if gt.dtype not in (jnp.float32, jnp.bfloat16):
        gt = gt.astype(jnp.float32)
    # Stream the mask as int8 (1 B/elem instead of 4).
    if msk.dtype == jnp.bool_:
        msk = msk.astype(jnp.int8)
    elif msk.dtype != jnp.int8:
        msk = (msk != 0).astype(jnp.int8)

    n = est.shape[0]
    rows = 32 * pl.cdiv(pl.cdiv(n, _LANES), 32)   # rows, rounded up to mult of 32
    pad = rows * _LANES - n
    if pad:  # only when n is not already a multiple of 4096 (mask=0 in padding)
        est = jnp.pad(est, (0, pad))
        gt = jnp.pad(gt, (0, pad))
        msk = jnp.pad(msk, (0, pad))
    est = est.reshape(rows, _LANES)
    gt = gt.reshape(rows, _LANES)
    msk = msk.reshape(rows, _LANES)

    # Tile rows: multiple of 32 (covers f32 / bf16 / int8 sublane tiling),
    # clamped so the block never exceeds the array.
    tr = max(32, (min(int(tile_rows), rows) // 32) * 32)
    blocks_total = pl.cdiv(rows, tr)
    num_chunks = 2 if blocks_total >= 2 else 1    # one chunk per v7x TensorCore
    spc = pl.cdiv(blocks_total, num_chunks)       # sequential steps per chunk
    mask_tail_rows = (num_chunks * spc * tr) != rows

    def in_idx(c, i):
        # Clamp so we never request a block starting past the array end.
        return (jnp.minimum(c * spc + i, blocks_total - 1), 0)

    kernel = functools.partial(
        _silog_partial_kernel,
        blocks_per_chunk=spc,
        valid_rows=rows,
        mask_tail_rows=mask_tail_rows)

    bytes_accessed = (est.size * est.dtype.itemsize
                      + gt.size * gt.dtype.itemsize
                      + msk.size
                      + num_chunks * 3 * _LANES * 4)

    parts = pl.pallas_call(
        kernel,
        out_shape=jax.ShapeDtypeStruct((num_chunks, 3, _LANES), jnp.float32),
        grid_spec=pltpu.PrefetchScalarGridSpec(
            num_scalar_prefetch=0,
            grid=(num_chunks, spc),
            in_specs=[
                pl.BlockSpec((tr, _LANES), in_idx),
                pl.BlockSpec((tr, _LANES), in_idx),
                pl.BlockSpec((tr, _LANES), in_idx),
            ],
            out_specs=pl.BlockSpec((1, 3, _LANES), lambda c, i: (c, 0, 0)),
            scratch_shapes=[pltpu.VMEM((1, _LANES), jnp.float32)] * 3,
        ),
        compiler_params=pltpu.CompilerParams(
            dimension_semantics=("parallel", "arbitrary")),
        cost_estimate=pl.CostEstimate(
            flops=10 * est.size,
            transcendentals=2 * est.size,
            bytes_accessed=int(bytes_accessed)),
    )(est, gt, msk)

    # Tiny epilogue in plain JAX: combine per-chunk / per-lane partials.
    sum_d = jnp.sum(parts[:, 0, :])
    sum_d2 = jnp.sum(parts[:, 1, :])
    cnt = jnp.sum(parts[:, 2, :])
    mean_d = sum_d / cnt
    return jnp.sqrt(sum_d2 / cnt - variance_focus * mean_d * mean_d) * 10.0


def silog_loss_ref(depth_est, depth_gt, mask, variance_focus):
    """Pure-JAX reference matching the PyTorch semantics."""
    m = mask.reshape(-1).astype(bool)
    est = depth_est.reshape(-1).astype(jnp.float32)
    gt = depth_gt.reshape(-1).astype(jnp.float32)
    d = jnp.where(m,
                  jnp.log(jnp.where(m, est, 1.0)) - jnp.log(jnp.where(m, gt, 1.0)),
                  0.0)
    cnt = jnp.sum(m.astype(jnp.float32))
    mean_d = jnp.sum(d) / cnt
    mean_d2 = jnp.sum(d * d) / cnt
    return jnp.sqrt(mean_d2 - variance_focus * mean_d ** 2) * 10.0


if __name__ == "__main__":
    root = jax.random.PRNGKey(0)
    variance_focus = 0.85

    def make_inputs(seed, shape, dtype=jnp.float32, p=0.7):
        k1, k2, k3 = jax.random.split(jax.random.fold_in(root, seed), 3)
        est = jax.random.uniform(k1, shape, jnp.float32, 0.5, 10.0).astype(dtype)
        gt = jax.random.uniform(k2, shape, jnp.float32, 0.5, 10.0).astype(dtype)
        m = jax.random.bernoulli(k3, p, shape)
        m = m.at[(0,) * len(shape)].set(True)   # ensure a non-empty mask
        return est, gt, m

    def check(seed, shape, dtype=jnp.float32, tile_rows=4096):
        est, gt, m = make_inputs(seed, shape, dtype)
        out = jax.block_until_ready(
            silog_loss(est, gt, m, variance_focus, tile_rows=tile_rows))
        ref = jax.block_until_ready(silog_loss_ref(est, gt, m, variance_focus))
        assert jnp.isfinite(out), (shape, out)
        assert jnp.allclose(out, ref, rtol=1e-4, atol=1e-4), (shape, out, ref)

    # Primary small case matching the module's depth-map layout (N, C, H, W).
    check(0, (2, 1, 16, 16))
    # Two-chunk (dual-TensorCore) path, even block split, wrapper tail pad.
    check(1, (2, 1, 48, 64), tile_rows=32)
    # Ragged row count: odd block count, clamped out-of-range tile, iota row mask.
    check(2, (1, 1, 80, 128), tile_rows=32)
    # bf16 depth streams on the pad-free fast path (element count % 4096 == 0).
    check(3, (1, 1, 32, 128), dtype=jnp.bfloat16)
    # Larger case on the default (4096-row) tile: multi-step reduction per chunk.
    check(4, (2, 1, 96, 512), dtype=jnp.float32)

    print("KERNEL_OK")
</pallas_src>

<mosaic_0001>
module attributes {stable_mosaic.version = 11 : i64} {
  func.func @_silog_partial_kernel(%arg0: i32, %arg1: i32, %arg2: memref<32x128xf32, #tpu.memory_space<vmem>>, %arg3: memref<32x128xf32, #tpu.memory_space<vmem>>, %arg4: memref<32x128xi8, #tpu.memory_space<vmem>>, %arg5: memref<1x3x128xf32, #tpu.memory_space<vmem>>, %arg6: memref<1x128xf32, #tpu.memory_space<vmem>>, %arg7: memref<1x128xf32, #tpu.memory_space<vmem>>, %arg8: memref<1x128xf32, #tpu.memory_space<vmem>>) attributes {dimension_semantics = [#tpu.dimension_semantics<parallel>, #tpu.dimension_semantics<arbitrary>], iteration_bounds = array<i64: 1, 1>, scalar_prefetch = 0 : i64, scratch_operands = 3 : i64, tpu.core_type = #tpu.core_type<tc>, window_params = [{transform_indices = @transform_0, window_bounds = array<i64: 32, 128>}, {transform_indices = @transform_1, window_bounds = array<i64: 32, 128>}, {transform_indices = @transform_2, window_bounds = array<i64: 32, 128>}, {transform_indices = @transform_3, window_bounds = array<i64: 1, 3, 128>}]} {
    %c0_i32 = arith.constant 0 : i32
    %0 = arith.cmpi eq, %arg1, %c0_i32 : i32
    %1 = arith.extui %0 : i1 to i32
    %c0_i32_0 = arith.constant 0 : i32
    %2 = arith.cmpi ne, %1, %c0_i32_0 : i32
    scf.if %2 {
      %cst_24 = arith.constant 0.000000e+00 : f32
      %36 = vector.broadcast %cst_24 : f32 to vector<1x128xf32>
      %c0_25 = arith.constant 0 : index
      %c0_26 = arith.constant 0 : index
      %37 = vector.load %arg6[%c0_25, %c0_26] : memref<1x128xf32, #tpu.memory_space<vmem>>, vector<1x128xf32>
      tpu.vector_store %arg6[%c0_25, %c0_26], %36 {strides = array<i32>} : memref<1x128xf32, #tpu.memory_space<vmem>>, vector<1x128xf32>,
      %cst_27 = arith.constant 0.000000e+00 : f32
      %38 = vector.broadcast %cst_27 : f32 to vector<1x128xf32>
      %c0_28 = arith.constant 0 : index
      %c0_29 = arith.constant 0 : index
      %39 = vector.load %arg7[%c0_28, %c0_29] : memref<1x128xf32, #tpu.memory_space<vmem>>, vector<1x128xf32>
      tpu.vector_store %arg7[%c0_28, %c0_29], %38 {strides = array<i32>} : memref<1x128xf32, #tpu.memory_space<vmem>>, vector<1x128xf32>,
      %cst_30 = arith.constant 0.000000e+00 : f32
      %40 = vector.broadcast %cst_30 : f32 to vector<1x128xf32>
      %c0_31 = arith.constant 0 : index
      %c0_32 = arith.constant 0 : index
      %41 = vector.load %arg8[%c0_31, %c0_32] : memref<1x128xf32, #tpu.memory_space<vmem>>, vector<1x128xf32>
      tpu.vector_store %arg8[%c0_31, %c0_32], %40 {strides = array<i32>} : memref<1x128xf32, #tpu.memory_space<vmem>>, vector<1x128xf32>,
    } else {
    }
    %c0 = arith.constant 0 : index
    %c0_1 = arith.constant 0 : index
    %3 = vector.load %arg4[%c0, %c0_1] : memref<32x128xi8, #tpu.memory_space<vmem>>, vector<32x128xi8>
    %c0_i8 = arith.constant 0 : i8
    %4 = vector.broadcast %c0_i8 : i8 to vector<32x128xi8>
    %5 = arith.cmpi ne, %3, %4 : vector<32x128xi8>
    %c0_2 = arith.constant 0 : index
    %c0_3 = arith.constant 0 : index
    %6 = vector.load %arg2[%c0_2, %c0_3] : memref<32x128xf32, #tpu.memory_space<vmem>>, vector<32x128xf32>
    %cst = arith.constant 1.000000e+00 : f32
    %7 = vector.broadcast %cst : f32 to vector<32x128xf32>
    %8 = arith.select %5, %6, %7 : vector<32x128xi1>, vector<32x128xf32>
    %c0_4 = arith.constant 0 : index
    %c0_5 = arith.constant 0 : index
    %9 = vector.load %arg3[%c0_4, %c0_5] : memref<32x128xf32, #tpu.memory_space<vmem>>, vector<32x128xf32>
    %cst_6 = arith.constant 1.000000e+00 : f32
    %10 = vector.broadcast %cst_6 : f32 to vector<32x128xf32>
    %11 = arith.select %5, %9, %10 : vector<32x128xi1>, vector<32x128xf32>
    %12 = math.log %8 : vector<32x128xf32>
    %13 = math.log %11 : vector<32x128xf32>
    %14 = arith.subf %12, %13 : vector<32x128xf32>
    %c0_7 = arith.constant 0 : index
    %c0_8 = arith.constant 0 : index
    %15 = vector.load %arg6[%c0_7, %c0_8] : memref<1x128xf32, #tpu.memory_space<vmem>>, vector<1x128xf32>
    %cst_9 = arith.constant dense<0.000000e+00> : vector<128xf32>
    %16 = vector.multi_reduction <add>, %14, %cst_9 [0] : vector<32x128xf32> to vector<128xf32>
    %17 = vector.shape_cast %16 : vector<128xf32> to vector<1x128xf32>
    %18 = arith.addf %15, %17 : vector<1x128xf32>
    %c0_10 = arith.constant 0 : index
    %c0_11 = arith.constant 0 : index
    %19 = vector.load %arg6[%c0_10, %c0_11] : memref<1x128xf32, #tpu.memory_space<vmem>>, vector<1x128xf32>
    tpu.vector_store %arg6[%c0_10, %c0_11], %18 {strides = array<i32>} : memref<1x128xf32, #tpu.memory_space<vmem>>, vector<1x128xf32>,
    %c0_12 = arith.constant 0 : index
    %c0_13 = arith.constant 0 : index
    %20 = vector.load %arg7[%c0_12, %c0_13] : memref<1x128xf32, #tpu.memory_space<vmem>>, vector<1x128xf32>
    %21 = arith.mulf %14, %14 : vector<32x128xf32>
    %cst_14 = arith.constant dense<0.000000e+00> : vector<128xf32>
    %22 = vector.multi_reduction <add>, %21, %cst_14 [0] : vector<32x128xf32> to vector<128xf32>
    %23 = vector.shape_cast %22 : vector<128xf32> to vector<1x128xf32>
    %24 = arith.addf %20, %23 : vector<1x128xf32>
    %c0_15 = arith.constant 0 : index
    %c0_16 = arith.constant 0 : index
    %25 = vector.load %arg7[%c0_15, %c0_16] : memref<1x128xf32, #tpu.memory_space<vmem>>, vector<1x128xf32>
    tpu.vector_store %arg7[%c0_15, %c0_16], %24 {strides = array<i32>} : memref<1x128xf32, #tpu.memory_space<vmem>>, vector<1x128xf32>,
    %c0_17 = arith.constant 0 : index
    %c0_18 = arith.constant 0 : index
    %26 = vector.load %arg8[%c0_17, %c0_18] : memref<1x128xf32, #tpu.memory_space<vmem>>, vector<1x128xf32>
    %27 = arith.extui %5 : vector<32x128xi1> to vector<32x128xi32>
    %28 = arith.sitofp %27 : vector<32x128xi32> to vector<32x128xf32>
    %cst_19 = arith.constant dense<0.000000e+00> : vector<128xf32>
    %29 = vector.multi_reduction <add>, %28, %cst_19 [0] : vector<32x128xf32> to vector<128xf32>
    %30 = vector.shape_cast %29 : vector<128xf32> to vector<1x128xf32>
    %31 = arith.addf %26, %30 : vector<1x128xf32>
    %c0_20 = arith.constant 0 : index
    %c0_21 = arith.constant 0 : index
    %32 = vector.load %arg8[%c0_20, %c0_21] : memref<1x128xf32, #tpu.memory_space<vmem>>, vector<1x128xf32>
    tpu.vector_store %arg8[%c0_20, %c0_21], %31 {strides = array<i32>} : memref<1x128xf32, #tpu.memory_space<vmem>>, vector<1x128xf32>,
    %c0_i32_22 = arith.constant 0 : i32
    %33 = arith.cmpi eq, %arg1, %c0_i32_22 : i32
    %34 = arith.extui %33 : i1 to i32
    %c0_i32_23 = arith.constant 0 : i32
    %35 = arith.cmpi ne, %34, %c0_i32_23 : i32
    scf.if %35 {
      %c0_24 = arith.constant 0 : index
      %c0_25 = arith.constant 0 : index
      %36 = vector.load %arg6[%c0_24, %c0_25] : memref<1x128xf32, #tpu.memory_space<vmem>>, vector<1x128xf32>
      %c0_26 = arith.constant 0 : index
      %c0_27 = arith.constant 0 : index
      %c0_28 = arith.constant 0 : index
      %37 = vector.load %arg5[%c0_26, %c0_27, %c0_28] : memref<1x3x128xf32, #tpu.memory_space<vmem>>, vector<1x1x128xf32>
      %38 = vector.shape_cast %37 : vector<1x1x128xf32> to vector<1x128xf32>
      %39 = vector.shape_cast %36 : vector<1x128xf32> to vector<1x1x128xf32>
      tpu.vector_store %arg5[%c0_26, %c0_27, %c0_28], %39 {strides = array<i32>} : memref<1x3x128xf32, #tpu.memory_space<vmem>>, vector<1x1x128xf32>,
      %c0_29 = arith.constant 0 : index
      %c0_30 = arith.constant 0 : index
      %40 = vector.load %arg7[%c0_29, %c0_30] : memref<1x128xf32, #tpu.memory_space<vmem>>, vector<1x128xf32>
      %c0_31 = arith.constant 0 : index
      %c1 = arith.constant 1 : index
      %c0_32 = arith.constant 0 : index
      %41 = vector.load %arg5[%c0_31, %c1, %c0_32] : memref<1x3x128xf32, #tpu.memory_space<vmem>>, vector<1x1x128xf32>
      %42 = vector.shape_cast %41 : vector<1x1x128xf32> to vector<1x128xf32>
      %43 = vector.shape_cast %40 : vector<1x128xf32> to vector<1x1x128xf32>
      tpu.vector_store %arg5[%c0_31, %c1, %c0_32], %43 {strides = array<i32>} : memref<1x3x128xf32, #tpu.memory_space<vmem>>, vector<1x1x128xf32>,
      %c0_33 = arith.constant 0 : index
      %c0_34 = arith.constant 0 : index
      %44 = vector.load %arg8[%c0_33, %c0_34] : memref<1x128xf32, #tpu.memory_space<vmem>>, vector<1x128xf32>
      %c0_35 = arith.constant 0 : index
      %c2 = arith.constant 2 : index
      %c0_36 = arith.constant 0 : index
      %45 = vector.load %arg5[%c0_35, %c2, %c0_36] : memref<1x3x128xf32, #tpu.memory_space<vmem>>, vector<1x1x128xf32>
      %46 = vector.shape_cast %45 : vector<1x1x128xf32> to vector<1x128xf32>
      %47 = vector.shape_cast %44 : vector<1x128xf32> to vector<1x1x128xf32>
      tpu.vector_store %arg5[%c0_35, %c2, %c0_36], %47 {strides = array<i32>} : memref<1x3x128xf32, #tpu.memory_space<vmem>>, vector<1x1x128xf32>,
    } else {
    }
    return
  }
  func.func @transform_0(%arg0: i32, %arg1: i32) -> (i32, i32) {
    %c1_i32 = arith.constant 1 : i32
    %0 = arith.muli %arg0, %c1_i32 : i32
    %1 = arith.addi %0, %arg1 : i32
    %c0_i32 = arith.constant 0 : i32
    %2 = arith.minsi %1, %c0_i32 : i32
    %c0_i32_0 = arith.constant 0 : i32
    %c0_i32_1 = arith.constant 0 : i32
    return %2, %c0_i32_0 : i32, i32
  }
  func.func @transform_1(%arg0: i32, %arg1: i32) -> (i32, i32) {
    %c1_i32 = arith.constant 1 : i32
    %0 = arith.muli %arg0, %c1_i32 : i32
    %1 = arith.addi %0, %arg1 : i32
    %c0_i32 = arith.constant 0 : i32
    %2 = arith.minsi %1, %c0_i32 : i32
    %c0_i32_0 = arith.constant 0 : i32
    %c0_i32_1 = arith.constant 0 : i32
    return %2, %c0_i32_0 : i32, i32
  }
  func.func @transform_2(%arg0: i32, %arg1: i32) -> (i32, i32) {
    %c1_i32 = arith.constant 1 : i32
    %0 = arith.muli %arg0, %c1_i32 : i32
    %1 = arith.addi %0, %arg1 : i32
    %c0_i32 = arith.constant 0 : i32
    %2 = arith.minsi %1, %c0_i32 : i32
    %c0_i32_0 = arith.constant 0 : i32
    %c0_i32_1 = arith.constant 0 : i32
    return %2, %c0_i32_0 : i32, i32
  }
  func.func @transform_3(%arg0: i32, %arg1: i32) -> (i32, i32, i32) {
    %c0_i32 = arith.constant 0 : i32
    %c0_i32_0 = arith.constant 0 : i32
    %c0_i32_1 = arith.constant 0 : i32
    return %arg0, %c0_i32, %c0_i32_0 : i32, i32, i32
  }
}

</mosaic_0001>

<bundles_post_ra>
// kernel: tpu_custom_call.1
= control target key start
LH: loop header
LB: loop body
LE: loop exit
PB: predicated region body
PF: predicated region fallthrough
CT: control target
= control target key end

     0   :  { %8 = vsyncpa [#allocation6], 0  ;;  %s420_s0 = inlined_call_operand.hbm [shape: f32[32,128], index: 0, kind: input, shape index: {}]   ;;  %s421_s1 = inlined_call_operand.hbm [shape: f32[32,128], index: 1, kind: input, shape index: {}]   ;;  %s422_s2 = inlined_call_operand.hbm [shape: s8[32,128], index: 2, kind: input, shape index: {}]   ;;  %s423_s3 = inlined_call_operand.vmem [shape: f32[1,3,128], index: 3, kind: output, shape index: {}]  }
   0x1   :  { %9 = vsyncpa [#allocation8], 0  ;;  %s39_s14 = sshll.u32 %s421_s1, 4  ;;  %s335_s15 = smov [#allocation7]   ;;  %s40_s14 = int_to_ptr.hbm [resolvable:$true] %s39_s14 }
   0x2   :  { %s41_s16 = sshll.u32 %s335_s15, 4  ;;  %s20_s19 = sshll.u32 %s420_s0, 4  ;;  %s42_s16 = int_to_ptr.vmem [resolvable:$true] %s41_s16  ;;  %s21_s19 = int_to_ptr.hbm [resolvable:$true] %s20_s19 }
   0x3   :  { %s336_s20 = smov 128   ;;  %s337_s21 = smov 8  }
   0x4   :  { %47 = dma.hbm_to_vmem [thread:$0]  %s40_s14, 512, %s42_s16, [#allocation8], %s336_s20, %s336_s20, %s337_s21  }
   0x5   :  { %s338_s22 = smov [#allocation5]   ;;  %s58_s26 = sshll.u32 %s422_s2, 4  ;;  %s59_s26 = int_to_ptr.hbm [resolvable:$true] %s58_s26 }
   0x6   :  { %s22_s23 = sshll.u32 %s338_s22, 4  ;;  %s339_s1 = smov [#allocation9]   ;;  %s23_s23 = int_to_ptr.vmem [resolvable:$true] %s22_s23 }
   0x7   :  { %28 = dma.hbm_to_vmem [thread:$0]  %s21_s19, 512, %s23_s23, [#allocation6], %s336_s20, %s336_s20, %s337_s21  }
   0x8   :  { %s60_s27 = sshll.u32 %s339_s1, 4  ;;  %s61_s27 = int_to_ptr.vmem [resolvable:$true] %s60_s27 }
   0x9   :  { %63 = dma.hbm_to_vmem [thread:$0]  %s59_s26, 128, %s61_s27, [#allocation8]  }
   0xa   :  { %331 = dma.done.wait [#allocation6], 512  }
   0xb   :  { %332 = vsyncadd [#allocation6], 4294966784 }
   0xc   :  { %333 = dma.done.wait [#allocation8], 640  }
   0xd   :  { %334 = vsyncadd [#allocation8], 4294966656  ;;  %v340_v0 = vmov 0.0   ;;  %v96_v1 = vld [vmem:[#allocation9] sm:$0xff]  ;;  %v341_v2 = vmov 0   ;;  %v99_v20 = vld [vmem:[#allocation5 + $0x8] sm:$0xff] }
   0xe   :  { %93 = vst [vmem:[#allocation2] sm:$0x1] %v340_v0  ;;  %vm97_vm0 = vnez %v96_v1  ;;  %v98_v19 = vld [vmem:[#allocation5] sm:$0xff]  ;;  %v100_v25 = vld [vmem:[#allocation5 + $0x10] sm:$0xff]  ;;  %v101_v27 = vld [vmem:[#allocation5 + $0x18] sm:$0xff] }
   0xf   :  { %94 = vst [vmem:[#allocation3] sm:$0x1] %v340_v0  ;;  %v102_v3 = vsel %vm97_vm0, 16843009, %v341_v2  ;;  %v135_v34 = vld [vmem:[#allocation7] sm:$0xff]  ;;  %v136_v36 = vld [vmem:[#allocation7 + $0x8] sm:$0xff] }
  0x10   :  { %95 = vst [vmem:[#allocation4] sm:$0x1] %v340_v0  ;;  %v103_v4 = vunpack.c.0.s8 %v102_v3  ;;  %v104_v5 = vunpack.c.1.s8 %v102_v3  ;;  %v105_v6 = vunpack.c.2.s8 %v102_v3  ;;  %v106_v7 = vunpack.c.3.s8 %v102_v3  ;;  %v137_v38 = vld [vmem:[#allocation7 + $0x10] sm:$0xff]  ;;  %v138_v41 = vld [vmem:[#allocation7 + $0x18] sm:$0xff] }
  0x12   :  { %v107_v8 = vpack.c.b16 %v103_v4, %v103_v4  ;;  %v109_v9 = vpack.c.b16 %v104_v5, %v104_v5  ;;  %v111_v10 = vpack.c.b16 %v105_v6, %v105_v6  ;;  %v113_v11 = vpack.c.b16 %v106_v7, %v106_v7 }
  0x14   :  { %v108_v12 = vpack.c.b8 %v107_v8, %v107_v8  ;;  %v110_v13 = vpack.c.b8 %v109_v9, %v109_v9  ;;  %v112_v14 = vpack.c.b8 %v111_v10, %v111_v10  ;;  %v114_v15 = vpack.c.b8 %v113_v11, %v113_v11 }
  0x16   :  { %vm115_vm1 = vnez %v108_v12  ;;  %vm116_vm2 = vnez %v110_v13  ;;  %vm117_vm3 = vnez %v112_v14  ;;  %vm118_vm4 = vnez %v114_v15 }
  0x17   :  { %v119_v16 = vsel %vm115_vm1, 16843009, %v341_v2  ;;  %v120_v17 = vsel %vm116_vm2, 16843009, %v341_v2  ;;  %v121_v18 = vsel %vm117_vm3, 16843009, %v341_v2 }
  0x18   :  { %v122_v21 = vsel %vm118_vm4, 16843009, %v341_v2  ;;  %v123_v22 = vunpack.c.0.s8 %v119_v16  ;;  %v124_v23 = vunpack.c.0.s8 %v120_v17  ;;  %v125_v24 = vunpack.c.0.s8 %v121_v18  ;;  %v191_v15 = vld [vmem:[#allocation4] sm:$0x1] }
  0x19   :  { %v126_v26 = vunpack.c.0.s8 %v122_v21 }
  0x1a   :  { %vm371_vm5 = vcmp.ne.s32.totalorder %v123_v22, 0  ;;  %vm375_vm6 = vcmp.ne.s32.totalorder %v124_v23, 0  ;;  %vm379_vm7 = vcmp.ne.s32.totalorder %v125_v24, 0 }
  0x1b   :  { %vm383_vm8 = vcmp.ne.s32.totalorder %v126_v26, 0  ;;  %v131_v32 = vsel %vm371_vm5, %v98_v19, 1.0  ;;  %v132_v33 = vsel %vm375_vm6, %v99_v20, 1.0  ;;  %v133_v35 = vsel %vm379_vm7, %v100_v25, 1.0 }
  0x1c   :  { %v134_v37 = vsel %vm383_vm8, %v101_v27, 1.0  ;;  %243 = vlog2.f32 %v131_v32  ;;  %v232_v39 = vsel %vm371_vm5, 1.0, %v340_v0  ;;  %v233_v40 = vsel %vm375_vm6, 1.0, %v340_v0 }
  0x1d   :  { %v139_v42 = vsel %vm371_vm5, %v135_v34, 1.0  ;;  %245 = vlog2.f32 %v132_v33  ;;  %v234_v43 = vsel %vm379_vm7, 1.0, %v340_v0  ;;  %v200_v44 = vadd.f32 %v233_v40, %v232_v39 }
  0x1e   :  { %v140_v45 = vsel %vm375_vm6, %v136_v36, 1.0  ;;  %247 = vlog2.f32 %v133_v35  ;;  %v235_v46 = vsel %vm383_vm8, 1.0, %v340_v0  ;;  %v141_v47 = vsel %vm379_vm7, %v137_v38, 1.0  ;;  %v163_v35 = vld [vmem:[#allocation2] sm:$0x1] }
  0x1f   :  { %249 = vlog2.f32 %v134_v37  ;;  %v201_v48 = vadd.f32 %v234_v43, %v200_v44  ;;  %v142_v49 = vsel %vm383_vm8, %v138_v41, 1.0  ;;  %v175_v38 = vld [vmem:[#allocation3] sm:$0x1] }
  0x20   :  { %251 = vlog2.f32 %v139_v42 }
  0x21   :  { %253 = vlog2.f32 %v140_v45  ;;  %v202_v50 = vadd.f32 %v235_v46, %v201_v48 }
  0x22   :  { %v244_v51 = vpop.eup %243  ;;  %255 = vlog2.f32 %v141_v47 }
  0x23   :  { %v246_v52 = vpop.eup %245  ;;  %257 = vlog2.f32 %v142_v49  ;;  %v203_v53 = vrot.slane %v202_v50, 4  ;;  %v144_v56 = vmul.f32 0.6931472, %v244_v51 }
  0x24   :  { %v248_v54 = vpop.eup %247  ;;  %v146_v59 = vmul.f32 0.6931472, %v246_v52 }
  0x25   :  { %v250_v55 = vpop.eup %249  ;;  %v204_v57 = vadd.f32 %v203_v53, %v202_v50  ;;  %v148_v61 = vmul.f32 0.6931472, %v248_v54 }
  0x26   :  { %v252_v58 = vpop.eup %251  ;;  %v150_v1 = vmul.f32 0.6931472, %v250_v55 }
  0x27   :  { %v254_v60 = vpop.eup %253  ;;  %v152_v62 = vmul.f32 0.6931472, %v252_v58  ;;  %v205_v63 = vrot.slane %v204_v57, 2 }
  0x28   :  { %v256_v0 = vpop.eup %255  ;;  %v154_v2 = vmul.f32 0.6931472, %v254_v60 }
  0x29   :  { %v258_v3 = vpop.eup %257  ;;  %v156_v4 = vmul.f32 0.6931472, %v256_v0  ;;  %v159_v5 = vsub.f32 %v144_v56, %v152_v62  ;;  %v206_v6 = vadd.f32 %v205_v63, %v204_v57 }
  0x2a   :  { %v158_v7 = vmul.f32 0.6931472, %v258_v3  ;;  %v160_v8 = vsub.f32 %v146_v59, %v154_v2 }
  0x2b   :  { %v161_v9 = vsub.f32 %v148_v61, %v156_v4  ;;  %v176_v10 = vmul.f32 %v159_v5, %v159_v5  ;;  %v207_v11 = vrot.slane %v206_v6, 1 }
  0x2c   :  { %v162_v12 = vsub.f32 %v150_v1, %v158_v7  ;;  %v164_v13 = vadd.f32 %v160_v8, %v159_v5  ;;  %v177_v14 = vmul.f32 %v160_v8, %v160_v8 }
  0x2d   :  { %v178_v16 = vmul.f32 %v161_v9, %v161_v9  ;;  %v208_v17 = vadd.f32 %v207_v11, %v206_v6 }
  0x2e   :  { %v165_v18 = vadd.f32 %v164_v13, %v161_v9  ;;  %v179_v19 = vmul.f32 %v162_v12, %v162_v12  ;;  %v180_v20 = vadd.f32 %v177_v14, %v176_v10 }
  0x2f   :  { %v209_v21 = vadd.f32 %v208_v17, %v191_v15 }
  0x30   :  { %v166_v22 = vadd.f32 %v165_v18, %v162_v12  ;;  %v181_v23 = vadd.f32 %v180_v20, %v178_v16 }
  0x31   :  { %210 = vst [vmem:[#allocation4] sm:$0x1] %v209_v21 }
  0x32   :  { %v167_v24 = vrot.slane %v166_v22, 4  ;;  %v182_v25 = vadd.f32 %v181_v23, %v179_v19 }
  0x34   :  { %v168_v26 = vadd.f32 %v167_v24, %v166_v22  ;;  %v183_v27 = vrot.slane %v182_v25, 4 }
  0x36   :  { %v169_v28 = vrot.slane %v168_v26, 2  ;;  %v184_v29 = vadd.f32 %v183_v27, %v182_v25 }
  0x38   :  { %v170_v30 = vadd.f32 %v169_v28, %v168_v26  ;;  %v185_v31 = vrot.slane %v184_v29, 2  ;;  %v218_v32 = vld [vmem:[#allocation4] sm:$0x1] }
  0x39   :  { %219 = vst [vmem:[%s423_s3 + $0x2] sm:$0x1] %v218_v32 }
  0x3a   :  { %v171_v33 = vrot.slane %v170_v30, 1  ;;  %v186_v34 = vadd.f32 %v185_v31, %v184_v29 }
  0x3c   :  { %v172_v36 = vadd.f32 %v171_v33, %v170_v30  ;;  %v187_v37 = vrot.slane %v186_v34, 1 }
  0x3e   :  { %v173_v39 = vadd.f32 %v172_v36, %v163_v35  ;;  %v188_v40 = vadd.f32 %v187_v37, %v186_v34 }
  0x40   :  { %174 = vst [vmem:[#allocation2] sm:$0x1] %v173_v39  ;;  %v189_v41 = vadd.f32 %v188_v40, %v175_v38 }
  0x42   :  { %190 = vst [vmem:[#allocation3] sm:$0x1] %v189_v41 }
  0x47   :  { %v214_v42 = vld [vmem:[#allocation2] sm:$0x1] }
  0x48   :  { %215 = vst [vmem:[%s423_s3] sm:$0x1] %v214_v42 }
  0x49   :  { %v216_v43 = vld [vmem:[#allocation3] sm:$0x1] }
  0x4a   :  { %217 = vst [vmem:[%s423_s3 + $0x1] sm:$0x1] %v216_v43 }
  0x4b   :  { %224 = vsyncpa [#allocation6], 1 }
  0x4c   :  { %225 = vsyncpa [#allocation8], 1 }

</bundles_post_ra>
